<compile_context>
chip_gen: v7x
topology: tpu7x:2x2x1
jax: 0.10.0
libtpu: 0.0.40
codegen_flags: <defaults>
</compile_context>

<pallas_src>
import functools

import jax
import jax.numpy as jnp
from jax.experimental import pallas as pl
from jax.experimental.pallas import tpu as pltpu


def _physical_vmem_bytes():
    """Per-TensorCore VMEM (64 MiB on v7x, 128 MiB on v5e/v6e); conservative fallback."""
    try:
        return int(pltpu.get_tpu_info().vmem_capacity_bytes)
    except Exception:
        return 64 << 20  # assume the smallest (v7x-sized) VMEM if the query fails


def _pick_batch_tile(B):
    # The output block is [b_tile, H]; its sublane dim must be a multiple of 8 or == B.
    # b_tile=8 keeps full sublanes, and whenever B is a multiple of 16 it yields >= 2
    # batch tiles so both v7x TensorCores get work on the "parallel" axis.
    # TODO(synk): for small B that is not a multiple of 16 (e.g. B=2..8) one v7x core
    # idles; splitting further would need sub-8 sublane output tiles.
    if B % 8 == 0:
        return 8
    return B


def _pick_seq_tile(S, cap):
    # s_tile is the sublane dim of the streamed [b_tile, s_tile, H] tile: it must be a
    # multiple of 8, or the full S (the (8,128) BlockSpec constraint).
    if S <= cap:
        return S
    for t in range(min(int(cap), S), 7, -1):
        if S % t == 0 and t % 8 == 0:
            return t
    return S  # no aligned divisor under the cap: stream the whole sequence


def _mean_pooler_fused_kernel(x_ref, w_ref, b_ref, o_ref, *, inv_total):
    # x_ref : [Bt, St, H]  tile of one of the last two layers (layer dim squeezed)
    # w_ref : [H, H]       pre-transposed Linear weight ([in, out]), single-buffered
    # b_ref : [1, H]       f32 bias
    # o_ref : [Bt, H] f32  output block, resident across both reduction axes; doubles
    #                      as the running token-sum accumulator.
    l = pl.program_id(1)
    s = pl.program_id(2)

    @pl.when((l == 0) & (s == 0))
    def _():
        o_ref[...] = jnp.zeros_like(o_ref)

    # Partial token sum for this tile; f32 accumulation without materializing an f32
    # copy of a bf16 tile first.
    o_ref[...] += jnp.sum(x_ref[...], axis=1, dtype=jnp.float32)

    is_last = (l == pl.num_programs(1) - 1) & (s == pl.num_programs(2) - 1)

    @pl.when(is_last)
    def _():
        pooled = o_ref[...] * inv_total                    # mean over the full 2*S tokens
        z = jnp.dot(pooled.astype(w_ref.dtype), w_ref[...],
                    preferred_element_type=jnp.float32)
        o_ref[...] = jnp.tanh(z + b_ref[...])


def _mean_pooler_sum_kernel(x_ref, o_ref, *, inv_total):
    # Unfused variant: pure HBM-streaming mean; Linear+Tanh is done by XLA outside.
    l = pl.program_id(1)
    s = pl.program_id(2)

    @pl.when((l == 0) & (s == 0))
    def _():
        o_ref[...] = jnp.zeros_like(o_ref)

    o_ref[...] += jnp.sum(x_ref[...], axis=1, dtype=jnp.float32)

    @pl.when((l == pl.num_programs(1) - 1) & (s == pl.num_programs(2) - 1))
    def _():
        o_ref[...] *= inv_total


def mean_pooler(hidden_states, weight, bias, *, b_tile=None, s_tile=None,
                weight_dtype=None, fuse_linear=None):
    """hidden_states: [L, B, S, H]; weight: [H_out, H_in] (PyTorch Linear layout); bias: [H].

    Returns tanh(mean over the last two layers' 2*S tokens @ W^T + b): [B, H] float32.
    """
    L, B, S, H = hidden_states.shape
    assert L >= 2
    assert weight.shape == (H, H) and bias.shape == (H,)

    x_itemsize = jnp.dtype(hidden_states.dtype).itemsize

    # Per-generation VMEM budget: never request all of physical VMEM (Mosaic needs
    # internal scratch + descriptor state).  64 MiB parts (v7x) -> ~51 MiB,
    # 128 MiB parts (v5e/v6e) -> ~102 MiB.
    phys_vmem = _physical_vmem_bytes()
    vmem_cap = max(32 << 20, min(phys_vmem - (12 << 20), int(phys_vmem * 0.80)))

    if b_tile is None:
        b_tile = _pick_batch_tile(B)
    assert B % b_tile == 0

    # Weight dtype for the fused finalize matmul: bf16 activations -> bf16 weight
    # (halves residency/DMA; the MXU is bf16 anyway and accumulation stays f32).
    if weight_dtype is None:
        weight_dtype = jnp.bfloat16 if hidden_states.dtype == jnp.bfloat16 else weight.dtype
    w_itemsize = jnp.dtype(weight_dtype).itemsize
    w_bytes = H * H * w_itemsize

    # Fuse Linear+Tanh only if the resident weight leaves most of VMEM for streamed
    # tiles; otherwise (large H, or v7x's 64 MiB) fall back to pooling-only kernel +
    # XLA linear (extra HBM traffic is just B*H*4 bytes).
    if fuse_linear is None:
        fuse_linear = w_bytes <= vmem_cap // 4

    resident_bytes = (w_bytes + 4 * H + 2 * b_tile * H * 4) if fuse_linear \
        else (2 * b_tile * H * 4)

    if s_tile is None:
        # Itemsize-aware tile sizing: aim for <= ~16 MB per pipelined input buffer
        # (bf16 tiles get 2x the tokens of f32), bounded by what fits next to the
        # resident weight/output in the per-generation budget.
        per_buf_budget = max(1 << 20,
                             min(16 << 20, (vmem_cap - resident_bytes - (2 << 20)) // 2))
        s_cap = max(8, per_buf_budget // (b_tile * H * x_itemsize))
        s_tile = _pick_seq_tile(S, s_cap)
    assert S % s_tile == 0

    grid = (B // b_tile, 2, S // s_tile)   # (batch, layer, seq) — reduction axes last

    in_buf_bytes = 2 * b_tile * s_tile * H * x_itemsize    # double-buffered streamed tiles
    vmem_limit = int(min(max(int(1.25 * (in_buf_bytes + resident_bytes)), 32 << 20),
                         vmem_cap))

    x_spec = pl.BlockSpec(
        (pl.Squeezed(), b_tile, s_tile, H),
        # Full [L,B,S,H] stack is passed; the layer grid axis picks layers L-2 and L-1,
        # so only those two layers are ever DMA'd.
        lambda b, l, s, L=L: (L - 2 + l, b, s, 0),
    )
    out_spec = pl.BlockSpec((b_tile, H), lambda b, l, s: (b, 0))
    compiler_params = pltpu.CompilerParams(
        dimension_semantics=("parallel", "arbitrary", "arbitrary"),
        vmem_limit_bytes=vmem_limit,
    )
    inv_total = 1.0 / (2.0 * S)

    if fuse_linear:
        w_t = weight.T.astype(weight_dtype)          # [H_in, H_out]: one-time transpose
        b2d = bias.reshape(1, H).astype(jnp.float32)
        cost = pl.CostEstimate(
            flops=2 * B * H * H + 2 * 2 * B * S * H,
            transcendentals=B * H,
            bytes_accessed=2 * B * S * H * x_itemsize + w_bytes + 4 * H + 4 * B * H,
        )
        return pl.pallas_call(
            functools.partial(_mean_pooler_fused_kernel, inv_total=inv_total),
            out_shape=jax.ShapeDtypeStruct((B, H), jnp.float32),
            grid_spec=pltpu.PrefetchScalarGridSpec(
                num_scalar_prefetch=0,
                grid=grid,
                in_specs=[
                    x_spec,
                    # Constant index_map: single-buffered, VMEM-resident across the grid.
                    pl.BlockSpec((H, H), lambda b, l, s: (0, 0),
                                 pipeline_mode=pl.Buffered(1)),
                    pl.BlockSpec((1, H), lambda b, l, s: (0, 0),
                                 pipeline_mode=pl.Buffered(1)),
                ],
                out_specs=out_spec,
            ),
            compiler_params=compiler_params,
            cost_estimate=cost,
        )(hidden_states, w_t, b2d)

    # Unfused path: Pallas kernel streams the mean; Linear + Tanh stay in XLA.
    cost = pl.CostEstimate(
        flops=2 * 2 * B * S * H,
        transcendentals=0,
        bytes_accessed=2 * B * S * H * x_itemsize + 4 * B * H,
    )
    pooled = pl.pallas_call(
        functools.partial(_mean_pooler_sum_kernel, inv_total=inv_total),
        out_shape=jax.ShapeDtypeStruct((B, H), jnp.float32),
        grid_spec=pltpu.PrefetchScalarGridSpec(
            num_scalar_prefetch=0,
            grid=grid,
            in_specs=[x_spec],
            out_specs=out_spec,
        ),
        compiler_params=compiler_params,
        cost_estimate=cost,
    )(hidden_states)
    return jnp.tanh(pooled @ weight.T.astype(jnp.float32) + bias.astype(jnp.float32))


def mean_pooler_ref(hidden_states, weight, bias):
    x1 = hidden_states[-2].astype(jnp.float32)
    x2 = hidden_states[-1].astype(jnp.float32)
    both = jnp.concatenate((x1, x2), axis=1)        # [B, 2S, H]
    pooled = jnp.mean(both, axis=1)                 # [B, H]
    return jnp.tanh(pooled @ weight.T + bias)


if __name__ == "__main__":
    # Small-shape stand-in for (layers, batch, seq=512, hidden=768).
    L, B, S, H = 4, 2, 8, 32

    key = jax.random.PRNGKey(0)
    k_hs, k_w, k_b = jax.random.split(key, 3)

    hidden_states = jax.random.normal(k_hs, (L, B, S, H), dtype=jnp.float32)
    # Deterministic nn.Linear(H, H) parameters (synthetic init, no checkpoint).
    weight = jax.random.normal(k_w, (H, H), dtype=jnp.float32) * (1.0 / jnp.sqrt(H))
    bias = jax.random.normal(k_b, (H,), dtype=jnp.float32) * 0.01

    ref = mean_pooler_ref(hidden_states, weight, bias)

    # Fused finalize (default for moderate H).
    out_fused = jax.block_until_ready(
        mean_pooler(hidden_states, weight, bias, fuse_linear=True))
    assert out_fused.shape == (B, H)
    assert jnp.allclose(out_fused, ref, atol=1e-5, rtol=1e-5)

    # Unfused path (what large-H / v7x configurations select automatically).
    out_unfused = jax.block_until_ready(
        mean_pooler(hidden_states, weight, bias, fuse_linear=False))
    assert out_unfused.shape == (B, H)
    assert jnp.allclose(out_unfused, ref, atol=1e-5, rtol=1e-5)

    print("KERNEL_OK")
</pallas_src>

<mosaic_0001>
module attributes {stable_mosaic.version = 11 : i64} {
  func.func @_mean_pooler_fused_kernel(%arg0: i32, %arg1: i32, %arg2: i32, %arg3: memref<1x2x8x32xf32, #tpu.memory_space<vmem>>, %arg4: memref<32x32xf32, #tpu.memory_space<vmem>>, %arg5: memref<1x32xf32, #tpu.memory_space<vmem>>, %arg6: memref<2x32xf32, #tpu.memory_space<vmem>>) attributes {dimension_semantics = [#tpu.dimension_semantics<parallel>, #tpu.dimension_semantics<arbitrary>, #tpu.dimension_semantics<arbitrary>], iteration_bounds = array<i64: 1, 2, 1>, scalar_prefetch = 0 : i64, scratch_operands = 0 : i64, tpu.core_type = #tpu.core_type<tc>, window_params = [{transform_indices = @transform_0, window_bounds = array<i64: 1, 2, 8, 32>}, {pipeline_mode = #tpu.pipeline_mode<synchronous>, transform_indices = @transform_1, window_bounds = array<i64: 32, 32>}, {pipeline_mode = #tpu.pipeline_mode<synchronous>, transform_indices = @transform_2, window_bounds = array<i64: 1, 32>}, {transform_indices = @transform_3, window_bounds = array<i64: 2, 32>}]} {
    %c0_i32 = arith.constant 0 : i32
    %0 = arith.cmpi eq, %arg1, %c0_i32 : i32
    %c0_i32_0 = arith.constant 0 : i32
    %1 = arith.cmpi eq, %arg2, %c0_i32_0 : i32
    %2 = arith.andi %0, %1 : i1
    %3 = arith.extui %2 : i1 to i32
    %c0_i32_1 = arith.constant 0 : i32
    %4 = arith.cmpi ne, %3, %c0_i32_1 : i32
    scf.if %4 {
      %cst_11 = arith.constant 0.000000e+00 : f32
      %16 = vector.broadcast %cst_11 : f32 to vector<2x32xf32>
      %c0_12 = arith.constant 0 : index
      %c0_13 = arith.constant 0 : index
      %17 = vector.load %arg6[%c0_12, %c0_13] : memref<2x32xf32, #tpu.memory_space<vmem>>, vector<2x32xf32>
      tpu.vector_store %arg6[%c0_12, %c0_13], %16 {strides = array<i32>} : memref<2x32xf32, #tpu.memory_space<vmem>>, vector<2x32xf32>,
    } else {
    }
    %c0 = arith.constant 0 : index
    %c0_2 = arith.constant 0 : index
    %5 = vector.load %arg6[%c0, %c0_2] : memref<2x32xf32, #tpu.memory_space<vmem>>, vector<2x32xf32>
    %c0_3 = arith.constant 0 : index
    %c0_4 = arith.constant 0 : index
    %c0_5 = arith.constant 0 : index
    %c0_6 = arith.constant 0 : index
    %6 = vector.load %arg3[%c0_3, %c0_4, %c0_5, %c0_6] : memref<1x2x8x32xf32, #tpu.memory_space<vmem>>, vector<1x2x8x32xf32>
    %7 = vector.shape_cast %6 : vector<1x2x8x32xf32> to vector<2x8x32xf32>
    %cst = arith.constant dense<0.000000e+00> : vector<2x32xf32>
    %8 = vector.multi_reduction <add>, %7, %cst [1] : vector<2x8x32xf32> to vector<2x32xf32>
    %9 = arith.addf %5, %8 : vector<2x32xf32>
    %c0_7 = arith.constant 0 : index
    %c0_8 = arith.constant 0 : index
    %10 = vector.load %arg6[%c0_7, %c0_8] : memref<2x32xf32, #tpu.memory_space<vmem>>, vector<2x32xf32>
    tpu.vector_store %arg6[%c0_7, %c0_8], %9 {strides = array<i32>} : memref<2x32xf32, #tpu.memory_space<vmem>>, vector<2x32xf32>,
    %c1_i32 = arith.constant 1 : i32
    %11 = arith.cmpi eq, %arg1, %c1_i32 : i32
    %c0_i32_9 = arith.constant 0 : i32
    %12 = arith.cmpi eq, %arg2, %c0_i32_9 : i32
    %13 = arith.andi %11, %12 : i1
    %14 = arith.extui %13 : i1 to i32
    %c0_i32_10 = arith.constant 0 : i32
    %15 = arith.cmpi ne, %14, %c0_i32_10 : i32
    scf.if %15 {
      %c0_11 = arith.constant 0 : index
      %c0_12 = arith.constant 0 : index
      %16 = vector.load %arg6[%c0_11, %c0_12] : memref<2x32xf32, #tpu.memory_space<vmem>>, vector<2x32xf32>
      %cst_13 = arith.constant 6.250000e-02 : f32
      %17 = vector.broadcast %cst_13 : f32 to vector<2x32xf32>
      %18 = arith.mulf %16, %17 : vector<2x32xf32>
      %c0_14 = arith.constant 0 : index
      %c0_15 = arith.constant 0 : index
      %19 = vector.load %arg4[%c0_14, %c0_15] : memref<32x32xf32, #tpu.memory_space<vmem>>, vector<32x32xf32>
      %cst_16 = arith.constant dense<0.000000e+00> : vector<2x32xf32>
      %20 = tpu.matmul %18, %19, %cst_16 {dimension_numbers = #tpu.dot_dimension_numbers<[1], [0], [0], [1], [0, 0, 1, 1], [], []>} : vector<2x32xf32>, vector<32x32xf32>, vector<2x32xf32> -> vector<2x32xf32>
      %c0_17 = arith.constant 0 : index
      %c0_18 = arith.constant 0 : index
      %21 = vector.load %arg5[%c0_17, %c0_18] : memref<1x32xf32, #tpu.memory_space<vmem>>, vector<1x32xf32>
      %22 = vector.broadcast %21 : vector<1x32xf32> to vector<2x32xf32>
      %23 = arith.addf %20, %22 : vector<2x32xf32>
      %24 = math.tanh %23 : vector<2x32xf32>
      %c0_19 = arith.constant 0 : index
      %c0_20 = arith.constant 0 : index
      %25 = vector.load %arg6[%c0_19, %c0_20] : memref<2x32xf32, #tpu.memory_space<vmem>>, vector<2x32xf32>
      tpu.vector_store %arg6[%c0_19, %c0_20], %24 {strides = array<i32>} : memref<2x32xf32, #tpu.memory_space<vmem>>, vector<2x32xf32>,
    } else {
    }
    return
  }
  func.func @transform_0(%arg0: i32, %arg1: i32, %arg2: i32) -> (i32, i32, i32, i32) {
    %c2_i32 = arith.constant 2 : i32
    %0 = arith.addi %c2_i32, %arg1 : i32
    %c0_i32 = arith.constant 0 : i32
    %c0_i32_0 = arith.constant 0 : i32
    return %0, %arg0, %arg2, %c0_i32 : i32, i32, i32, i32
  }
  func.func @transform_1(%arg0: i32, %arg1: i32, %arg2: i32) -> (i32, i32) {
    %c0_i32 = arith.constant 0 : i32
    %c0_i32_0 = arith.constant 0 : i32
    %c0_i32_1 = arith.constant 0 : i32
    return %c0_i32, %c0_i32_0 : i32, i32
  }
  func.func @transform_2(%arg0: i32, %arg1: i32, %arg2: i32) -> (i32, i32) {
    %c0_i32 = arith.constant 0 : i32
    %c0_i32_0 = arith.constant 0 : i32
    %c0_i32_1 = arith.constant 0 : i32
    return %c0_i32, %c0_i32_0 : i32, i32
  }
  func.func @transform_3(%arg0: i32, %arg1: i32, %arg2: i32) -> (i32, i32) {
    %c0_i32 = arith.constant 0 : i32
    %c0_i32_0 = arith.constant 0 : i32
    return %arg0, %c0_i32 : i32, i32
  }
}

</mosaic_0001>

<bundles_post_ra>
// kernel: tpu_custom_call.1
= control target key start
LH: loop header
LB: loop body
LE: loop exit
PB: predicated region body
PF: predicated region fallthrough
CT: control target
= control target key end

     0   :  { %8 = vsyncpa [#allocation3], 0  ;;  %s943_s0 = inlined_call_operand.hbm [shape: f32[4,2,8,32], index: 0, kind: input, shape index: {}]   ;;  %s944_s1 = inlined_call_operand.hbm [shape: f32[32,32], index: 1, kind: input, shape index: {}]   ;;  %s945_s2 = inlined_call_operand.vmem [shape: f32[1,32], index: 2, kind: input, shape index: {}]   ;;  %s946_s3 = inlined_call_operand.hbm [shape: f32[2,32], index: 3, kind: output, shape index: {}]  }
   0x1   :  { %10 = vsyncpa [#allocation3 + $0x1], 0 }
   0x2   :  { %11 = vsyncpa [#allocation6], 0 }
   0x3   :  { %12 = vsyncpa [#allocation4], 0  ;;  %s741_s12 = smov 0   ;;  %s743_s13 = smov 0  }
   0x4   :  { %s745_s14 = smov 0   ;;  %s747_s15 = smov 0  }
   0x5   :  { %s749_s16 = smov 0   ;;  %s751_s17 = smov 0  }
   0x6 LB: > { %s443_s18 = sadd.s32 4294967295, %s710_s17   ;;  %p63_p0 = scmp.ne.s32.totalorder %s694_s13, %s690_s12  ;;  %s710_s17 = sphi %s751_s17, %s18_s17   ;;  %s706_s16 = sphi %s749_s16, %s964_s16   ;;  %s702_s15 = sphi %s747_s15, %s963_s15   ;;  %s698_s14 = sphi %s745_s14, %s962_s14   ;;  %s694_s13 = sphi %s743_s13, %s961_s13   ;;  %s690_s12 = sphi %s741_s12, %s960_s12  }
   0x7   : > { %p773_p1 = scmp.eq.s32.totalorder %s443_s18, 0  ;;  %p444_p2 = scmp.ge.s32.totalorder %s710_s17, 1 }
   0x8   : > { %p142_p3 = scmp.lt.s32.totalorder %s710_s17, 3  ;;  %s712_s22 = smov [#allocation5]  }
   0x9   : > { %s951_s19 = scalar_select %p773_p1, 1, 0 }
   0xa   : > { %p781_p4 = por %p773_p1, %p63_p0  ;;  %p785_p5 = pnand %p444_p2, %p142_p3 }
   0xb   : > { %s154_s23 = sshll.u32 %s712_s22, 4  ;;  %s33_s25 = sadd.s32 1, %s706_s16  ;;  %s155_s23 = int_to_ptr.vmem [resolvable:$true] %s154_s23 }
   0xc   : > { %s952_s20 = scalar_select %p781_p4, 1, 0 }
   0xd   : > { %s953_s21 = scalar_select %p785_p5, 1, 0 }
   0xe   : > { %p496_p6 = pneg %p785_p5  ;;  %s567_s28 = scalar_lea.hbm %s944_s1, 512 }
   0xf   : > { %p568_p8 = scmp.ne.s32.totalorder %s944_s1, %s567_s28  ;;  %p574_p12 = scmp.lt.u32.totalorder %s567_s28, %s944_s1 }
  0x10   : > { %p793_p7 = pnand %p496_p6, %p773_p1 }
  0x12   : > { %p569_p9 = pneg %p793_p7 }
  0x14   : > { %p570_p10 = pnand %p569_p9, %p568_p8 }
  0x16   : > { %p571_p11 = pneg %p570_p10 }
  0x18   : > { %p576_p13 = pnand %p574_p12, %p571_p11 }
  0x1a   : > { %579 = shalt.err (!%p576_p13)
}
  0x1b   : > { %s580_s6 = scalar_lea.vmem %s155_s23, 512  ;;  %p588_p6 = scmp.lt.s32.totalorder %s155_s23, %s155_s23 }
  0x1c   : > { %p581_p0 = scmp.ne.s32.totalorder %s155_s23, %s580_s6  ;;  %p589_p1 = scmp.lt.s32.totalorder %s580_s6, %s580_s6 }
  0x1e   : > { %p583_p2 = pnand %p581_p0, %p569_p9  ;;  %p590_p4 = por %p589_p1, %p588_p6 }
  0x20   : > { %p584_p3 = pneg %p583_p2 }
  0x22   : > { %p591_p5 = pnand %p590_p4, %p584_p3 }
  0x24   : > { %594 = shalt.err (!%p591_p5)
}
  0x25   : > { %s713_s7 = smov 128   ;;  %s714_s8 = smov 8  }
  0x26   : > { %499 = dma.hbm_to_vmem [thread:$0]  (!%p793_p7), %s944_s1, 512, %s155_s23, [#allocation6], %s713_s7, %s713_s7, %s714_s8  }
  0x27   : > { %p35_p1 = scmp.ge.s32.totalorder %s33_s25, 2  ;;  %s41_s11 = sadd.s32 2, %s706_s16 }
  0x28   : > { %s50_s12 = sadd.s32 1, %s698_s14  ;;  %p57_p4 = scmp.ne.s32.totalorder %s698_s14, %s694_s13 }
  0x29   : > { %s966_s25 = smov (%p35_p1, %s33_s25), 0  ;;  %p58_p5 = scmp.eq.s32.totalorder %s710_s17, 0 }
  0x2a   : > { %p505_p8 = scmp.lt.s32.totalorder %s710_s17, 2  ;;  %s42_s22 = sadd.s32 2, %s966_s25 }
  0x2b   : > { %s171_s24 = sand.u32 1, %s698_s14   ;;  %s43_s26 = ssub.s32 %s41_s11, %s42_s22 }
  0x2c   : > { %p59_p9 = por %p58_p5, %p57_p4  ;;  %p48_p10 = scmp.eq.s32.totalorder %s43_s26, 0 }
  0x2d   : > { %s447_s27 = sshll.u32 %s171_s24, 4  ;;  %s461_s28 = sshll.u32 %s706_s16, 8 }
  0x2e   : > { %s829_s29 = scalar_select %p48_p10, %s698_s14, %s50_s12  }
  0x2f   : > { %s392_s4 = scalar_lea.hbm %s943_s0, %s461_s28  ;;  %s175_s6 = scalar_lea.vmem [#allocation2], %s447_s27 }
  0x30   : > { %s834_s5 = scalar_lea.hbm %s392_s4, 512  ;;  %s186_s9 = sshll.u32 %s175_s6, 4  ;;  %s836_s9 = int_to_ptr.vmem [resolvable:$true] %s186_s9 }
  0x31   : > { %p840_p7 = pnand %p505_p8, %p59_p9  ;;  %s844_s11 = scalar_lea.sflag [#allocation3], %s171_s24 }
  0x32   : > { %s625_s12 = scalar_lea.hbm %s392_s4, 768  ;;  %s600_s27 = scalar_lea.hbm %s943_s0, 1024 }
  0x33   : > { %p596_p11 = scmp.ne.s32.totalorder %s834_s5, %s625_s12  ;;  %p597_p12 = pneg %p840_p7 }
  0x34   : > { %p601_p2 = scmp.lt.u32.totalorder %s834_s5, %s943_s0  ;;  %p602_p3 = scmp.lt.u32.totalorder %s600_s27, %s625_s12 }
  0x35   : > { %p598_p13 = pnand %p597_p12, %p596_p11  ;;  %p604_p1 = scmp.lt.u32.totalorder %s625_s12, %s834_s5 }
  0x36   : > { %p603_p6 = por %p602_p3, %p601_p2 }
  0x37   : > { %p599_p0 = pneg %p598_p13 }
  0x38   : > { %p605_p4 = por %p604_p1, %p603_p6 }
  0x3a   : > { %p606_p5 = pnand %p605_p4, %p599_p0 }
  0x3c   : > { %609 = shalt.err (!%p606_p5)
}
  0x3d   : > { %s610_s24 = scalar_lea.vmem %s836_s9, 256  ;;  %s715_s30 = smov [#allocation2]  }
  0x3e   : > { %p611_p8 = scmp.ne.s32.totalorder %s836_s9, %s610_s24  ;;  %s615_s4 = sshll.u32 %s715_s30, 4  ;;  %s616_s4 = int_to_ptr.vmem [resolvable:$false] %s615_s4 }
  0x3f   : > { %s617_s6 = scalar_lea.vmem %s616_s4, 512  ;;  %p618_p11 = scmp.lt.s32.totalorder %s836_s9, %s616_s4 }
  0x40   : > { %p613_p9 = pnand %p611_p8, %p597_p12  ;;  %p619_p13 = scmp.lt.s32.totalorder %s617_s6, %s610_s24 }
  0x42   : > { %p614_p10 = pneg %p613_p9  ;;  %p620_p2 = por %p619_p13, %p618_p11 }
  0x44   : > { %p621_p3 = pnand %p620_p2, %p614_p10 }
  0x46   : > { %624 = shalt.err (!%p621_p3)
}
  0x47   : > { %503 = dma.hbm_to_vmem [thread:$0]  (!%p840_p7), %s834_s5, 256, %s836_s9, %s844_s11, %s713_s7, %s713_s7, %s714_s8  }
  0x48   : > { %p956_p12 = scmp.ne.s32.totalorder %s953_s21, 0 }
  0x49   : > { %s200_s12 = sand.u32 (!%p956_p12), 1, %s694_s13   ;;  %p957_p0 = scmp.ne.s32.totalorder (!%p956_p12), %s952_s20, 0 }
  0x4a   : > { %198 = sbr.rel (%p956_p12) target bundleno = 372 (0x174), region = 32  ;;  %s451_s22 = sshll.u32 (!%p956_p12), %s200_s12, 4 }
  0x4b   : > { %s201_s26 = scalar_lea.sflag (!%p956_p12), [#allocation3], %s200_s12  ;;  %s204_s27 = scalar_lea.vmem (!%p956_p12), [#allocation2], %s451_s22 }
  0x51   : > { %677 = dma.done.wait (%p957_p0), %s201_s26, 256  }
  0x52   : > { %679 = vsyncadd (%p957_p0), %s201_s26, 4294967040  ;;  %p958_p6 = scmp.ne.s32.totalorder %s951_s19, 0 }
  0x54   : > { %681 = dma.done.wait (%p958_p6), [#allocation6], 512  }
  0x55   : > { %683 = vsyncadd (%p958_p6), [#allocation6], 4294966784  ;;  %p228_p7 = scmp.eq.s32.totalorder %s702_s15, 0 }
  0x56   : > { %vm234_vm0 = vcmask (%p228_p7), 254976   ;;  %v716_v0 = vmov (%p228_p7), 0.0  }
  0x57   : > { %233 = sbr.rel (!%p228_p7) target bundleno = 94 (0x5e), region = 44  ;;  %235 = vst.msk [vmem:[#allocation7] sm:$0x3] (%p228_p7), %vm234_vm0, %v716_v0 }
  0x5e PF: > { %v237_v1 = vld [vmem:[%s204_s27] sm:$0xff]  ;;  %v238_v2 = vld [vmem:[%s204_s27 + $0x8] sm:$0xff]  ;;  %vm239_vm1 = vcmask 261120   ;;  %p262_p1 = scmp.eq.s32.totalorder %s702_s15, 1  ;;  %vm256_vm2 = vcmask 1041409   ;;  %vm260_vm3 = vcmask 254976  }
  0x5f   : > { %v240_v3 = vsel %vm239_vm1, %v237_v1, 0.0  ;;  %v247_v4 = vsel %vm239_vm1, %v238_v2, 0.0  ;;  %v236_v15 = vld [vmem:[#allocation7] sm:$0x3]  ;;  %v270_v21 = vld [vmem:[#allocation5 + $0x8] sm:$0xff] (%p262_p1)  ;;  %v271_v22 = vld [vmem:[#allocation5 + $0x10] sm:$0xff] (%p262_p1) }
  0x60   : > { %v241_v5 = vrot.slane %v240_v3, 4  ;;  %v248_v6 = vrot.slane %v247_v4, 4  ;;  %v269_v20 = vld [vmem:[#allocation5] sm:$0xff] (%p262_p1)  ;;  %v717_v23 = vmov (%p262_p1), 0.0|0.0   ;;  %v272_v25 = vld [vmem:[#allocation5 + $0x18] sm:$0xff] (%p262_p1)  ;;  %vm718_vm4 = vmmov (%p262_p1), 0  }
  0x61   : > { %480 = vmatprep.subr.bf16.mxu0 (%p262_p1), %v717_v23  ;;  %v481_v24 = vpack.c.bf16 (%p262_p1), %v270_v21, %v269_v20  ;;  %v719_v26 = vmov (%p262_p1), 0.0   ;;  %v484_v27 = vpack.c.bf16 (%p262_p1), %v272_v25, %v271_v22  ;;  %v455_v30 = vld [vmem:[%s945_s2] ss:$0 sm:$0xff] (%p262_p1) }
  0x62   : > { %v242_v7 = vadd.f32 %v241_v5, %v240_v3  ;;  %v249_v8 = vadd.f32 %v248_v6, %v247_v4  ;;  %477 = vmatprep.mubr.msk.f32.mxu0 (%p262_p1), %vm718_vm4, %v719_v26 }
  0x63   : > { %482 = vmatpush3.bf16.msra.mxu0 (%p262_p1), %v481_v24 }
  0x64   : > { %v243_v9 = vrot.slane %v242_v7, 2  ;;  %v250_v10 = vrot.slane %v249_v8, 2  ;;  %483 = vmatprep.subr.bf16.mxu0 (%p262_p1), %v717_v23 }
  0x66   : > { %v244_v11 = vadd.f32 %v243_v9, %v242_v7  ;;  %v251_v12 = vadd.f32 %v250_v10, %v249_v8 }
  0x67   : > { %485 = vmatpush3.bf16.msra.mxu0 (%p262_p1), %v484_v27 }
  0x68   : > { %v245_v13 = vrot.slane %v244_v11, 1  ;;  %v252_v14 = vrot.slane %v251_v12, 1 }
  0x69   : > { %266 = sbr.rel (!%p262_p1) target bundleno = 347 (0x15b), region = 48 }
  0x6a   : > { %v246_v16 = vadd.f32 %v245_v13, %v244_v11  ;;  %v253_v17 = vadd.f32 %v252_v14, %v251_v12 }
  0x6c   : > { %v257_v18 = vsel %vm256_vm2, %v253_v17, %v246_v16 }
  0x6d   : > { %v259_v19 = vadd.f32 %v257_v18, %v236_v15 }
  0x6f   : > { %261 = vst.msk [vmem:[#allocation7] sm:$0x3] %vm260_vm3, %v259_v19 }
  0x76   : > { %v267_v28 = vld [vmem:[#allocation7] sm:$0x3] }
  0x77   : > { %v268_v29 = vmul.f32 0.0625, %v267_v28 }
  0x79   : > { %478 = vmatmul.mubr.msk.f32.vlgmr.msra.gmra.mrb[0].mxu0 %vm239_vm1, %v268_v29 }
 0x14c   : > { %v349_v31 = vpop.f32.mrb[0].mxu0 }
 0x14d   : > { %v350_v32 = vadd.f32 %v455_v30, %v349_v31  ;;  %v479_v33 = vpop.f32.mrb[1].mxu0 }
 0x14f   : > { %565 = vtanh.f32 %v350_v32 }
 0x159   : > { %v566_v34 = vpop.eup %565 }
 0x15a   : > { %354 = vst.msk [vmem:[#allocation7] sm:$0x3] %vm260_vm3, %v566_v34 }
 0x15b PF: > { %p899_p4 = scmp.eq.s32.totalorder %s443_s18, 1  ;;  %s720_s21 = smov [#allocation7]  }
 0x15c   : > { %s364_s7 = sshll.u32 %s720_s21, 4  ;;  %s365_s7 = int_to_ptr.vmem [resolvable:$true] %s364_s7 }
 0x15d   : > { %s626_s8 = scalar_lea.vmem %s365_s7, 32  ;;  %p633_p10 = scmp.lt.s32.totalorder %s365_s7, %s365_s7 }
 0x15e   : > { %p627_p5 = scmp.ne.s32.totalorder %s365_s7, %s626_s8  ;;  %p634_p11 = scmp.lt.s32.totalorder %s626_s8, %s626_s8 }
 0x160   : > { %p628_p8 = pnand %p627_p5, %p899_p4  ;;  %p635_p13 = por %p634_p11, %p633_p10 }
 0x162   : > { %p629_p9 = pneg %p628_p8 }
 0x164   : > { %p636_p2 = pnand %p635_p13, %p629_p9 }
 0x166   : > { %639 = shalt.err (!%p636_p2)
}
 0x167   : > { %s640_s18 = scalar_lea.hbm %s946_s3, 32 }
 0x168   : > { %p641_p3 = scmp.ne.s32.totalorder %s946_s3, %s640_s18  ;;  %p646_p6 = scmp.lt.u32.totalorder %s640_s18, %s946_s3 }
 0x16a   : > { %p642_p12 = pnand %p641_p3, %p899_p4 }
 0x16c   : > { %p643_p0 = pneg %p642_p12 }
 0x16e   : > { %p648_p7 = pnand %p646_p6, %p643_p0 }
 0x170   : > { %651 = shalt.err (!%p648_p7)
}
 0x171   : > { %493 = dma.vmem_to_hbm [thread:$0]  (%p899_p4), %s365_s7, 32, %s946_s3, [#allocation4]  }
 0x172   : > { %685 = dma.done.wait (%p899_p4), [#allocation4], 32  }
 0x173   : > { %687 = vsyncadd (%p899_p4), [#allocation4], 4294967264 }
 0x174 PF: > { %s18_s17 = sadd.s32 1, %s710_s17   ;;  %s960_s12 = smov %s694_s13 }
 0x175   : > { %p15_p1 = scmp.ge.s32.totalorder %s18_s17, 4   ;;  %s961_s13 = smov %s698_s14 }
 0x176   : > { %s962_s14 = smov %s829_s29  ;;  %s963_s15 = smov %s706_s16 }
 0x177   : > { %s964_s16 = smov %s966_s25  ;;  %17 = sbr.rel (!%p15_p1) target bundleno = 6 (0x6), region = 82 }
 0x17e   :  { %377 = vsyncpa [#allocation3], 1 }
 0x17f   :  { %379 = vsyncpa [#allocation3 + $0x1], 1 }
 0x180   :  { %380 = vsyncpa [#allocation6], 1 }
 0x181   :  { %381 = vsyncpa [#allocation4], 1 }
 0x182   :  { %383 = vsyncpa [#allocation4 + $0x1], 1 }

</bundles_post_ra>
